<compile_context>
chip_gen: v7x
topology: tpu7x:2x2x1
jax: 0.10.0
libtpu: 0.0.40
codegen_flags: <defaults>
</compile_context>

<pallas_src>
import jax
import jax.numpy as jnp
import numpy as np
from jax import lax
from jax.experimental import pallas as pl
from jax.experimental.pallas import tpu as pltpu

NUM_FEATURES = 5
NUM_NEIGHBORS = 8
NUM_DIMENSIONS = 2
MLP_HIDDEN = 5

# Deterministic stand-ins for the torch.nn.Parameter(rand(...)) scalars.
SIGMA = 1.3
PHI = 8.0
TAU = 0.7

_MLP_DIMS = [(NUM_FEATURES, MLP_HIDDEN), (MLP_HIDDEN, MLP_HIDDEN),
             (MLP_HIDDEN, MLP_HIDDEN), (MLP_HIDDEN, 1)]

# Row offsets inside the combined (40, N) core-kernel input.
_ROW_POS = 0
_ROW_OSELF = 2
_ROW_YSELF = 3
_ROW_NPOS = 8
_ROW_ONBR = 24
_ROW_YNBR = 32
_NUM_ROWS = 40


# ---------------------------------------------------------------------------
# Kernel 1: node-wise MLP (Linear(F,5) ReLU x3 ... Linear(5,1)).
# Weights live in one (8, 128) VMEM tile: column l*8+f holds W_l[f, :] across
# sublanes (rows >= n_out are zero), column l*8+n_in holds the bias.  Each layer
# is an outer-product accumulation on an (8, T) hidden slab.
# ---------------------------------------------------------------------------
def mlp_kernel(w_ref, x_ref, o_ref):
    h = x_ref[...]                                     # (8, T); rows >= F are zero
    T = h.shape[-1]
    n_layers = len(_MLP_DIMS)
    for li, (n_in, n_out) in enumerate(_MLP_DIMS):
        base = li * 8
        # bias column, lane-broadcast to (8, T)
        acc = jnp.broadcast_to(w_ref[:, base + n_in:base + n_in + 1], (8, T))
        for f in range(n_in):
            # (8,1) weight column  x  (1,T) hidden row  ->  (8,T) outer-product FMA
            acc = acc + w_ref[:, base + f:base + f + 1] * h[f:f + 1, :]
        h = acc if li + 1 == n_layers else jnp.maximum(acc, 0.0)
    o_ref[...] = h[0:1, :]                             # (1, T)


# ---------------------------------------------------------------------------
# Kernel 2: NNGLS core (vectorized over a tile of T nodes, node axis in lanes).
#   cov_vec = sigma^2 exp(-||pos_i - pos_{N(i)}|| / phi)          (K, T)
#   C       = sigma^2 exp(-pdist(N(i)) / phi) + tau^2 I           (K slabs of (K,T))
#   solve C b = cov_vec via unrolled Gauss-Jordan (SPD + nugget -> no pivoting),
#   carrying cov_vec as the RHS slab (no explicit inverse).
#   F = sigma^2 + tau^2 - b.cov_vec,  v = [1,-b]/sqrt(F)
#   dpred = v.[o_i, o_N(i)],  dtgt = v.[y_i, y_N(i)],  preds = sqrt(F)(dpred + b.y_N(i))
# ---------------------------------------------------------------------------
def nngls_kernel(params_ref, in_ref, out_ref):
    K, D = NUM_NEIGHBORS, NUM_DIMENSIONS
    sigma = params_ref[0]
    phi = params_ref[1]
    tau = params_ref[2]
    sigma2 = sigma * sigma
    tau2 = tau * tau
    neg_inv_phi = -1.0 / phi

    pos = in_ref[_ROW_POS:_ROW_POS + D, :]               # (D, T)
    npos = in_ref[_ROW_NPOS:_ROW_NPOS + D * K, :]        # (D*K, T), row d*K + k
    T = pos.shape[-1]

    nd = [npos[d * K:(d + 1) * K, :] for d in range(D)]  # D slabs of (K, T)

    # One-hot sublane masks, built once and reused (nugget + GJ row fix-up).
    sub_iota = lax.broadcasted_iota(jnp.int32, (K, 1), 0)
    onehot = [sub_iota == i for i in range(K)]            # K x (K, 1) bool

    # --- covariance vector Sigma(i, N(i)) ------------------------------------
    d2 = jnp.zeros((K, T), jnp.float32)
    for d in range(D):
        diff = nd[d] - pos[d:d + 1, :]
        d2 = d2 + diff * diff
    cov_vec = sigma2 * jnp.exp(jnp.sqrt(d2) * neg_inv_phi)          # (K, T)

    # --- covariance matrix rows Sigma(N(i), N(i)) + tau^2 I -------------------
    # (Symmetry-packed EUP reduction from the review left for a later pass; the
    #  sqrt/exp slabs below are the remaining EUP load once spills are gone.)
    A = []
    for i in range(K):
        d2m = jnp.zeros((K, T), jnp.float32)
        for d in range(D):
            diff = nd[d] - nd[d][i:i + 1, :]
            d2m = d2m + diff * diff
        row = sigma2 * jnp.exp(jnp.sqrt(d2m) * neg_inv_phi)
        row = row + tau2 * onehot[i].astype(jnp.float32)            # diagonal nugget
        A.append(row)                                               # (K, T)

    # --- solve C b = cov_vec, unrolled Gauss-Jordan, RHS carried as a slab ----
    rhs = cov_vec                                                    # (K, T)
    for k in range(K):
        piv = A[k][k:k + 1, :]                          # (1, T), >= tau^2 > 0
        r = pl.reciprocal(piv, approx=True)
        inv_piv = r * (2.0 - piv * r)                   # one Newton step
        pr_a = A[k] * inv_piv                           # (K, T) normalized pivot row
        pr_rhs = rhs[k:k + 1, :] * inv_piv              # (1, T)
        facs = [A[i][k:k + 1, :] for i in range(K)]     # multiplier column pieces
        fac_col = jnp.concatenate(facs, axis=0)         # (K, T) packed column
        new_A = []
        for i in range(K):
            if i == k:
                new_A.append(pr_a)
            else:
                new_A.append(A[i] - facs[i] * pr_a)
        A = new_A
        rhs = jnp.where(onehot[k], pr_rhs, rhs - fac_col * pr_rhs)  # (K, T)

    b = rhs                                             # (K, T) == C^{-1} cov_vec

    # --- F, v, decorrelated predictions / targets -----------------------------
    f = (sigma2 + tau2) - jnp.sum(b * cov_vec, axis=0, keepdims=True)   # (1, T)
    inv_sqrt_f = lax.rsqrt(f)
    sqrt_f = f * inv_sqrt_f

    o_self = in_ref[_ROW_OSELF:_ROW_OSELF + 1, :]
    y_self = in_ref[_ROW_YSELF:_ROW_YSELF + 1, :]
    o_nbr = in_ref[_ROW_ONBR:_ROW_ONBR + K, :]
    y_nbr = in_ref[_ROW_YNBR:_ROW_YNBR + K, :]

    b_dot_o = jnp.sum(b * o_nbr, axis=0, keepdims=True)
    b_dot_y = jnp.sum(b * y_nbr, axis=0, keepdims=True)

    dpred = (o_self - b_dot_o) * inv_sqrt_f             # v . [o_i, o_N(i)]
    dtgt = (y_self - b_dot_y) * inv_sqrt_f              # v . [y_i, y_N(i)]
    preds = sqrt_f * (dpred + b_dot_y)

    out_ref[...] = jnp.concatenate([dpred, dtgt, preds], axis=0)    # (3, T) one store


# ---------------------------------------------------------------------------
# Wrappers around pallas_call
# ---------------------------------------------------------------------------
def run_mlp(w_tile, x_t, tile):
    _, Np = x_t.shape
    return pl.pallas_call(
        mlp_kernel,
        out_shape=jax.ShapeDtypeStruct((1, Np), jnp.float32),
        grid=(Np // tile,),
        in_specs=[pl.BlockSpec((8, 128), lambda i: (0, 0)),          # weights (1 vreg)
                  pl.BlockSpec((8, tile), lambda i: (0, i))],
        out_specs=pl.BlockSpec((1, tile), lambda i: (0, i)),
        compiler_params=pltpu.CompilerParams(dimension_semantics=("parallel",)),
    )(w_tile, x_t)


def run_nngls_core(params, combined, tile):
    R, Np = combined.shape
    return pl.pallas_call(
        nngls_kernel,
        out_shape=jax.ShapeDtypeStruct((3, Np), jnp.float32),
        grid=(Np // tile,),
        in_specs=[pl.BlockSpec(memory_space=pltpu.MemorySpace.SMEM),  # sigma/phi/tau
                  pl.BlockSpec((R, tile), lambda i: (0, i))],         # single input DMA
        out_specs=pl.BlockSpec((3, tile), lambda i: (0, i)),
        compiler_params=pltpu.CompilerParams(dimension_semantics=("parallel",)),
    )(params, combined)


def pack_mlp_weights(mlp_weights):
    """Pack all MLP weights/biases into one (8, 128) f32 tile (one vreg)."""
    w_tile = np.zeros((8, 128), np.float32)
    for li, (n_in, n_out) in enumerate(_MLP_DIMS):
        w = np.asarray(mlp_weights[2 * li], np.float32)               # (n_in, n_out)
        b = np.asarray(mlp_weights[2 * li + 1], np.float32).reshape(-1)
        base = li * 8
        w_tile[:n_out, base:base + n_in] = w.T                        # col base+f = W[f, :]
        w_tile[:n_out, base + n_in] = b                               # bias column
    return jnp.asarray(w_tile)


def _pad_cols(a, mult):
    np_ = int(pl.cdiv(a.shape[-1], mult)) * mult
    pad = np_ - a.shape[-1]
    if pad == 0:
        return a
    return jnp.pad(a, [(0, 0)] * (a.ndim - 1) + [(0, pad)])


def nngls_forward(pos, neighbor_idx, x, y, mlp_weights, mlp_tile=512, core_tile=256):
    """Full NNGLS forward. neighbor_idx[i, k] = node index of the k-th neighbor of node i.
    core_tile=256 keeps the unrolled solve inside the 64-vreg file on all
    generations (use 128 on v5e if desired); mlp_tile can stay larger."""
    N = pos.shape[0]
    D, K, F = NUM_DIMENSIONS, NUM_NEIGHBORS, NUM_FEATURES

    params = jnp.array([SIGMA, PHI, TAU, 0.0], jnp.float32)
    w_tile = pack_mlp_weights(mlp_weights)

    # batch.o = mlp(batch.x)  — Pallas kernel 1 (feature rows padded to 8 sublanes)
    x_t = jnp.pad(x.astype(jnp.float32).T, ((0, 8 - F), (0, 0)))      # (8, N)
    o_row = run_mlp(w_tile, _pad_cols(x_t, mlp_tile), mlp_tile)       # (1, Np_mlp)
    o_flat = o_row[0, :N]                                             # (N,)

    # MessagePassing gathers (Gather*Conv / CovarianceVectorConv) — XLA glue,
    # emitted directly in the lane-major layout of the single (40, N) input slab.
    pos_f = pos.astype(jnp.float32)
    y_f = y.astype(jnp.float32)
    npos_nkd = pos_f[neighbor_idx]                                    # (N, K, D)
    npos_t = jnp.transpose(npos_nkd, (2, 1, 0)).reshape(D * K, N)     # row d*K + k
    o_nbr = o_flat[neighbor_idx].T                                    # (K, N)
    y_nbr = y_f[neighbor_idx].T                                       # (K, N)
    head = jnp.concatenate([pos_f.T, o_flat[None, :], y_f[None, :],
                            jnp.zeros((8 - D - 2, N), jnp.float32)], axis=0)   # (8, N)
    combined = jnp.concatenate([head, npos_t, o_nbr, y_nbr], axis=0)  # (40, N)

    # Core NNGLS math — Pallas kernel 2 (lane-dense (3, N) output)
    out = run_nngls_core(params, _pad_cols(combined, core_tile), core_tile)
    return out[0, :N], out[1, :N], out[2, :N]


# ---------------------------------------------------------------------------
# Pure-JAX reference (mirrors the PyTorch module) + deterministic init
# ---------------------------------------------------------------------------
def init_mlp_params(key):
    params = []
    for fan_in, fan_out in _MLP_DIMS:
        key, kw, kb = jax.random.split(key, 3)
        bound = 1.0 / np.sqrt(fan_in)
        w = jax.random.uniform(kw, (fan_in, fan_out), jnp.float32, -bound, bound)
        b = jax.random.uniform(kb, (1, fan_out), jnp.float32, -bound, bound)
        params += [w, b]
    return params


def reference_forward(pos, neighbor_idx, x, y, mlp_weights):
    sigma, phi, tau = SIGMA, PHI, TAU
    K = NUM_NEIGHBORS
    N = pos.shape[0]
    npos = pos[neighbor_idx]                                          # (N, K, D)
    dvec = jnp.sqrt(jnp.sum((pos[:, None, :] - npos) ** 2, axis=-1))
    cov_vec = sigma ** 2 * jnp.exp(-dvec / phi)
    pd = jnp.sqrt(jnp.sum((npos[:, :, None, :] - npos[:, None, :, :]) ** 2, axis=-1))
    C = sigma ** 2 * jnp.exp(-pd / phi) + tau ** 2 * jnp.eye(K, dtype=jnp.float32)
    inv = jnp.linalg.inv(C)
    b = jnp.einsum('nk,nkj->nj', cov_vec, inv)
    f = sigma ** 2 + tau ** 2 - jnp.sum(b * cov_vec, axis=1)

    w1, b1, w2, b2, w3, b3, w4, b4 = mlp_weights
    h = jnp.maximum(x @ w1 + b1, 0.0)
    h = jnp.maximum(h @ w2 + b2, 0.0)
    h = jnp.maximum(h @ w3 + b3, 0.0)
    o = (h @ w4 + b4)[:, 0]

    nout = jnp.concatenate([o[:, None], o[neighbor_idx]], axis=1)
    ntgt = jnp.concatenate([y[:, None], y[neighbor_idx]], axis=1)
    v = jnp.concatenate([jnp.ones((N, 1), jnp.float32), -b], axis=1) / jnp.sqrt(f)[:, None]
    dpred = jnp.sum(v * nout, axis=1)
    dtgt = jnp.sum(v * ntgt, axis=1)
    preds = jnp.sqrt(f) * (dpred + jnp.sum(b * ntgt[:, 1:], axis=1))
    return dpred, dtgt, preds


if __name__ == "__main__":
    N = 1024
    MLP_TILE = 512    # 2 grid steps at N=1024
    CORE_TILE = 256   # 4 grid steps (2 per v7x TensorCore), fits the vreg file

    key = jax.random.PRNGKey(0)
    kpos, kx, ky, kmlp = jax.random.split(key, 4)
    pos = jax.random.uniform(kpos, (N, NUM_DIMENSIONS), jnp.float32, 0.0, 10.0)
    x = jax.random.normal(kx, (N, NUM_FEATURES), jnp.float32)
    y = jax.random.normal(ky, (N,), jnp.float32)
    # Synthetic graph: node i's K neighbors are nodes i+1 .. i+K (mod N).
    neighbor_idx = (jnp.arange(N)[:, None] + jnp.arange(1, NUM_NEIGHBORS + 1)[None, :]) % N
    mlp_weights = init_mlp_params(kmlp)

    dpred, dtgt, preds = nngls_forward(pos, neighbor_idx, x, y, mlp_weights,
                                       mlp_tile=MLP_TILE, core_tile=CORE_TILE)
    jax.block_until_ready((dpred, dtgt, preds))

    r_dpred, r_dtgt, r_preds = reference_forward(pos, neighbor_idx, x, y, mlp_weights)
    np.testing.assert_allclose(np.asarray(dpred), np.asarray(r_dpred), rtol=2e-3, atol=2e-3)
    np.testing.assert_allclose(np.asarray(dtgt), np.asarray(r_dtgt), rtol=2e-3, atol=2e-3)
    np.testing.assert_allclose(np.asarray(preds), np.asarray(r_preds), rtol=2e-3, atol=2e-3)
    print("KERNEL_OK")
</pallas_src>

<mosaic_0001>
module attributes {stable_mosaic.version = 11 : i64} {
  func.func @mlp_kernel(%arg0: i32, %arg1: memref<8x128xf32, #tpu.memory_space<vmem>>, %arg2: memref<8x512xf32, #tpu.memory_space<vmem>>, %arg3: memref<1x512xf32, #tpu.memory_space<vmem>>) attributes {dimension_semantics = [#tpu.dimension_semantics<parallel>], iteration_bounds = array<i64: 2>, scalar_prefetch = 0 : i64, scratch_operands = 0 : i64, tpu.core_type = #tpu.core_type<tc>, window_params = [{pipeline_mode = #tpu.pipeline_mode<synchronous>, transform_indices = @transform_0, window_bounds = array<i64: 8, 128>}, {transform_indices = @transform_1, window_bounds = array<i64: 8, 512>}, {transform_indices = @transform_2, window_bounds = array<i64: 1, 512>}]} {
    %c0 = arith.constant 0 : index
    %c0_0 = arith.constant 0 : index
    %0 = vector.load %arg2[%c0, %c0_0] : memref<8x512xf32, #tpu.memory_space<vmem>>, vector<8x512xf32>
    %c0_1 = arith.constant 0 : index
    %c5 = arith.constant 5 : index
    %1 = vector.load %arg1[%c0_1, %c5] : memref<8x128xf32, #tpu.memory_space<vmem>>, vector<8x1xf32>
    %2 = vector.shape_cast %1 : vector<8x1xf32> to vector<8x1xf32>
    %3 = vector.broadcast %2 : vector<8x1xf32> to vector<8x512xf32>
    %c0_2 = arith.constant 0 : index
    %c0_3 = arith.constant 0 : index
    %4 = vector.load %arg1[%c0_2, %c0_3] : memref<8x128xf32, #tpu.memory_space<vmem>>, vector<8x1xf32>
    %5 = vector.extract_strided_slice %0 {offsets = [0, 0], sizes = [1, 512], strides = [1, 1]} : vector<8x512xf32> to vector<1x512xf32>
    %6 = vector.broadcast %4 : vector<8x1xf32> to vector<8x512xf32>
    %7 = vector.broadcast %5 : vector<1x512xf32> to vector<8x512xf32>
    %8 = arith.mulf %6, %7 : vector<8x512xf32>
    %9 = arith.addf %3, %8 : vector<8x512xf32>
    %c0_4 = arith.constant 0 : index
    %c1 = arith.constant 1 : index
    %10 = vector.load %arg1[%c0_4, %c1] : memref<8x128xf32, #tpu.memory_space<vmem>>, vector<8x1xf32>
    %11 = vector.extract_strided_slice %0 {offsets = [1, 0], sizes = [1, 512], strides = [1, 1]} : vector<8x512xf32> to vector<1x512xf32>
    %12 = vector.broadcast %10 : vector<8x1xf32> to vector<8x512xf32>
    %13 = vector.broadcast %11 : vector<1x512xf32> to vector<8x512xf32>
    %14 = arith.mulf %12, %13 : vector<8x512xf32>
    %15 = arith.addf %9, %14 : vector<8x512xf32>
    %c0_5 = arith.constant 0 : index
    %c2 = arith.constant 2 : index
    %16 = vector.load %arg1[%c0_5, %c2] : memref<8x128xf32, #tpu.memory_space<vmem>>, vector<8x1xf32>
    %17 = vector.extract_strided_slice %0 {offsets = [2, 0], sizes = [1, 512], strides = [1, 1]} : vector<8x512xf32> to vector<1x512xf32>
    %18 = vector.broadcast %16 : vector<8x1xf32> to vector<8x512xf32>
    %19 = vector.broadcast %17 : vector<1x512xf32> to vector<8x512xf32>
    %20 = arith.mulf %18, %19 : vector<8x512xf32>
    %21 = arith.addf %15, %20 : vector<8x512xf32>
    %c0_6 = arith.constant 0 : index
    %c3 = arith.constant 3 : index
    %22 = vector.load %arg1[%c0_6, %c3] : memref<8x128xf32, #tpu.memory_space<vmem>>, vector<8x1xf32>
    %23 = vector.extract_strided_slice %0 {offsets = [3, 0], sizes = [1, 512], strides = [1, 1]} : vector<8x512xf32> to vector<1x512xf32>
    %24 = vector.broadcast %22 : vector<8x1xf32> to vector<8x512xf32>
    %25 = vector.broadcast %23 : vector<1x512xf32> to vector<8x512xf32>
    %26 = arith.mulf %24, %25 : vector<8x512xf32>
    %27 = arith.addf %21, %26 : vector<8x512xf32>
    %c0_7 = arith.constant 0 : index
    %c4 = arith.constant 4 : index
    %28 = vector.load %arg1[%c0_7, %c4] : memref<8x128xf32, #tpu.memory_space<vmem>>, vector<8x1xf32>
    %29 = vector.extract_strided_slice %0 {offsets = [4, 0], sizes = [1, 512], strides = [1, 1]} : vector<8x512xf32> to vector<1x512xf32>
    %30 = vector.broadcast %28 : vector<8x1xf32> to vector<8x512xf32>
    %31 = vector.broadcast %29 : vector<1x512xf32> to vector<8x512xf32>
    %32 = arith.mulf %30, %31 : vector<8x512xf32>
    %33 = arith.addf %27, %32 : vector<8x512xf32>
    %cst = arith.constant 0.000000e+00 : f32
    %34 = vector.broadcast %cst : f32 to vector<8x512xf32>
    %35 = arith.maximumf %33, %34 : vector<8x512xf32>
    %c0_8 = arith.constant 0 : index
    %c13 = arith.constant 13 : index
    %36 = vector.load %arg1[%c0_8, %c13] : memref<8x128xf32, #tpu.memory_space<vmem>>, vector<8x1xf32>
    %37 = vector.shape_cast %36 : vector<8x1xf32> to vector<8x1xf32>
    %38 = vector.broadcast %37 : vector<8x1xf32> to vector<8x512xf32>
    %c0_9 = arith.constant 0 : index
    %c8 = arith.constant 8 : index
    %39 = vector.load %arg1[%c0_9, %c8] : memref<8x128xf32, #tpu.memory_space<vmem>>, vector<8x1xf32>
    %40 = vector.extract_strided_slice %35 {offsets = [0, 0], sizes = [1, 512], strides = [1, 1]} : vector<8x512xf32> to vector<1x512xf32>
    %41 = vector.broadcast %39 : vector<8x1xf32> to vector<8x512xf32>
    %42 = vector.broadcast %40 : vector<1x512xf32> to vector<8x512xf32>
    %43 = arith.mulf %41, %42 : vector<8x512xf32>
    %44 = arith.addf %38, %43 : vector<8x512xf32>
    %c0_10 = arith.constant 0 : index
    %c9 = arith.constant 9 : index
    %45 = vector.load %arg1[%c0_10, %c9] : memref<8x128xf32, #tpu.memory_space<vmem>>, vector<8x1xf32>
    %46 = vector.extract_strided_slice %35 {offsets = [1, 0], sizes = [1, 512], strides = [1, 1]} : vector<8x512xf32> to vector<1x512xf32>
    %47 = vector.broadcast %45 : vector<8x1xf32> to vector<8x512xf32>
    %48 = vector.broadcast %46 : vector<1x512xf32> to vector<8x512xf32>
    %49 = arith.mulf %47, %48 : vector<8x512xf32>
    %50 = arith.addf %44, %49 : vector<8x512xf32>
    %c0_11 = arith.constant 0 : index
    %c10 = arith.constant 10 : index
    %51 = vector.load %arg1[%c0_11, %c10] : memref<8x128xf32, #tpu.memory_space<vmem>>, vector<8x1xf32>
    %52 = vector.extract_strided_slice %35 {offsets = [2, 0], sizes = [1, 512], strides = [1, 1]} : vector<8x512xf32> to vector<1x512xf32>
    %53 = vector.broadcast %51 : vector<8x1xf32> to vector<8x512xf32>
    %54 = vector.broadcast %52 : vector<1x512xf32> to vector<8x512xf32>
    %55 = arith.mulf %53, %54 : vector<8x512xf32>
    %56 = arith.addf %50, %55 : vector<8x512xf32>
    %c0_12 = arith.constant 0 : index
    %c11 = arith.constant 11 : index
    %57 = vector.load %arg1[%c0_12, %c11] : memref<8x128xf32, #tpu.memory_space<vmem>>, vector<8x1xf32>
    %58 = vector.extract_strided_slice %35 {offsets = [3, 0], sizes = [1, 512], strides = [1, 1]} : vector<8x512xf32> to vector<1x512xf32>
    %59 = vector.broadcast %57 : vector<8x1xf32> to vector<8x512xf32>
    %60 = vector.broadcast %58 : vector<1x512xf32> to vector<8x512xf32>
    %61 = arith.mulf %59, %60 : vector<8x512xf32>
    %62 = arith.addf %56, %61 : vector<8x512xf32>
    %c0_13 = arith.constant 0 : index
    %c12 = arith.constant 12 : index
    %63 = vector.load %arg1[%c0_13, %c12] : memref<8x128xf32, #tpu.memory_space<vmem>>, vector<8x1xf32>
    %64 = vector.extract_strided_slice %35 {offsets = [4, 0], sizes = [1, 512], strides = [1, 1]} : vector<8x512xf32> to vector<1x512xf32>
    %65 = vector.broadcast %63 : vector<8x1xf32> to vector<8x512xf32>
    %66 = vector.broadcast %64 : vector<1x512xf32> to vector<8x512xf32>
    %67 = arith.mulf %65, %66 : vector<8x512xf32>
    %68 = arith.addf %62, %67 : vector<8x512xf32>
    %cst_14 = arith.constant 0.000000e+00 : f32
    %69 = vector.broadcast %cst_14 : f32 to vector<8x512xf32>
    %70 = arith.maximumf %68, %69 : vector<8x512xf32>
    %c0_15 = arith.constant 0 : index
    %c21 = arith.constant 21 : index
    %71 = vector.load %arg1[%c0_15, %c21] : memref<8x128xf32, #tpu.memory_space<vmem>>, vector<8x1xf32>
    %72 = vector.shape_cast %71 : vector<8x1xf32> to vector<8x1xf32>
    %73 = vector.broadcast %72 : vector<8x1xf32> to vector<8x512xf32>
    %c0_16 = arith.constant 0 : index
    %c16 = arith.constant 16 : index
    %74 = vector.load %arg1[%c0_16, %c16] : memref<8x128xf32, #tpu.memory_space<vmem>>, vector<8x1xf32>
    %75 = vector.extract_strided_slice %70 {offsets = [0, 0], sizes = [1, 512], strides = [1, 1]} : vector<8x512xf32> to vector<1x512xf32>
    %76 = vector.broadcast %74 : vector<8x1xf32> to vector<8x512xf32>
    %77 = vector.broadcast %75 : vector<1x512xf32> to vector<8x512xf32>
    %78 = arith.mulf %76, %77 : vector<8x512xf32>
    %79 = arith.addf %73, %78 : vector<8x512xf32>
    %c0_17 = arith.constant 0 : index
    %c17 = arith.constant 17 : index
    %80 = vector.load %arg1[%c0_17, %c17] : memref<8x128xf32, #tpu.memory_space<vmem>>, vector<8x1xf32>
    %81 = vector.extract_strided_slice %70 {offsets = [1, 0], sizes = [1, 512], strides = [1, 1]} : vector<8x512xf32> to vector<1x512xf32>
    %82 = vector.broadcast %80 : vector<8x1xf32> to vector<8x512xf32>
    %83 = vector.broadcast %81 : vector<1x512xf32> to vector<8x512xf32>
    %84 = arith.mulf %82, %83 : vector<8x512xf32>
    %85 = arith.addf %79, %84 : vector<8x512xf32>
    %c0_18 = arith.constant 0 : index
    %c18 = arith.constant 18 : index
    %86 = vector.load %arg1[%c0_18, %c18] : memref<8x128xf32, #tpu.memory_space<vmem>>, vector<8x1xf32>
    %87 = vector.extract_strided_slice %70 {offsets = [2, 0], sizes = [1, 512], strides = [1, 1]} : vector<8x512xf32> to vector<1x512xf32>
    %88 = vector.broadcast %86 : vector<8x1xf32> to vector<8x512xf32>
    %89 = vector.broadcast %87 : vector<1x512xf32> to vector<8x512xf32>
    %90 = arith.mulf %88, %89 : vector<8x512xf32>
    %91 = arith.addf %85, %90 : vector<8x512xf32>
    %c0_19 = arith.constant 0 : index
    %c19 = arith.constant 19 : index
    %92 = vector.load %arg1[%c0_19, %c19] : memref<8x128xf32, #tpu.memory_space<vmem>>, vector<8x1xf32>
    %93 = vector.extract_strided_slice %70 {offsets = [3, 0], sizes = [1, 512], strides = [1, 1]} : vector<8x512xf32> to vector<1x512xf32>
    %94 = vector.broadcast %92 : vector<8x1xf32> to vector<8x512xf32>
    %95 = vector.broadcast %93 : vector<1x512xf32> to vector<8x512xf32>
    %96 = arith.mulf %94, %95 : vector<8x512xf32>
    %97 = arith.addf %91, %96 : vector<8x512xf32>
    %c0_20 = arith.constant 0 : index
    %c20 = arith.constant 20 : index
    %98 = vector.load %arg1[%c0_20, %c20] : memref<8x128xf32, #tpu.memory_space<vmem>>, vector<8x1xf32>
    %99 = vector.extract_strided_slice %70 {offsets = [4, 0], sizes = [1, 512], strides = [1, 1]} : vector<8x512xf32> to vector<1x512xf32>
    %100 = vector.broadcast %98 : vector<8x1xf32> to vector<8x512xf32>
    %101 = vector.broadcast %99 : vector<1x512xf32> to vector<8x512xf32>
    %102 = arith.mulf %100, %101 : vector<8x512xf32>
    %103 = arith.addf %97, %102 : vector<8x512xf32>
    %cst_21 = arith.constant 0.000000e+00 : f32
    %104 = vector.broadcast %cst_21 : f32 to vector<8x512xf32>
    %105 = arith.maximumf %103, %104 : vector<8x512xf32>
    %c0_22 = arith.constant 0 : index
    %c29 = arith.constant 29 : index
    %106 = vector.load %arg1[%c0_22, %c29] : memref<8x128xf32, #tpu.memory_space<vmem>>, vector<8x1xf32>
    %107 = vector.shape_cast %106 : vector<8x1xf32> to vector<8x1xf32>
    %108 = vector.broadcast %107 : vector<8x1xf32> to vector<8x512xf32>
    %c0_23 = arith.constant 0 : index
    %c24 = arith.constant 24 : index
    %109 = vector.load %arg1[%c0_23, %c24] : memref<8x128xf32, #tpu.memory_space<vmem>>, vector<8x1xf32>
    %110 = vector.extract_strided_slice %105 {offsets = [0, 0], sizes = [1, 512], strides = [1, 1]} : vector<8x512xf32> to vector<1x512xf32>
    %111 = vector.broadcast %109 : vector<8x1xf32> to vector<8x512xf32>
    %112 = vector.broadcast %110 : vector<1x512xf32> to vector<8x512xf32>
    %113 = arith.mulf %111, %112 : vector<8x512xf32>
    %114 = arith.addf %108, %113 : vector<8x512xf32>
    %c0_24 = arith.constant 0 : index
    %c25 = arith.constant 25 : index
    %115 = vector.load %arg1[%c0_24, %c25] : memref<8x128xf32, #tpu.memory_space<vmem>>, vector<8x1xf32>
    %116 = vector.extract_strided_slice %105 {offsets = [1, 0], sizes = [1, 512], strides = [1, 1]} : vector<8x512xf32> to vector<1x512xf32>
    %117 = vector.broadcast %115 : vector<8x1xf32> to vector<8x512xf32>
    %118 = vector.broadcast %116 : vector<1x512xf32> to vector<8x512xf32>
    %119 = arith.mulf %117, %118 : vector<8x512xf32>
    %120 = arith.addf %114, %119 : vector<8x512xf32>
    %c0_25 = arith.constant 0 : index
    %c26 = arith.constant 26 : index
    %121 = vector.load %arg1[%c0_25, %c26] : memref<8x128xf32, #tpu.memory_space<vmem>>, vector<8x1xf32>
    %122 = vector.extract_strided_slice %105 {offsets = [2, 0], sizes = [1, 512], strides = [1, 1]} : vector<8x512xf32> to vector<1x512xf32>
    %123 = vector.broadcast %121 : vector<8x1xf32> to vector<8x512xf32>
    %124 = vector.broadcast %122 : vector<1x512xf32> to vector<8x512xf32>
    %125 = arith.mulf %123, %124 : vector<8x512xf32>
    %126 = arith.addf %120, %125 : vector<8x512xf32>
    %c0_26 = arith.constant 0 : index
    %c27 = arith.constant 27 : index
    %127 = vector.load %arg1[%c0_26, %c27] : memref<8x128xf32, #tpu.memory_space<vmem>>, vector<8x1xf32>
    %128 = vector.extract_strided_slice %105 {offsets = [3, 0], sizes = [1, 512], strides = [1, 1]} : vector<8x512xf32> to vector<1x512xf32>
    %129 = vector.broadcast %127 : vector<8x1xf32> to vector<8x512xf32>
    %130 = vector.broadcast %128 : vector<1x512xf32> to vector<8x512xf32>
    %131 = arith.mulf %129, %130 : vector<8x512xf32>
    %132 = arith.addf %126, %131 : vector<8x512xf32>
    %c0_27 = arith.constant 0 : index
    %c28 = arith.constant 28 : index
    %133 = vector.load %arg1[%c0_27, %c28] : memref<8x128xf32, #tpu.memory_space<vmem>>, vector<8x1xf32>
    %134 = vector.extract_strided_slice %105 {offsets = [4, 0], sizes = [1, 512], strides = [1, 1]} : vector<8x512xf32> to vector<1x512xf32>
    %135 = vector.broadcast %133 : vector<8x1xf32> to vector<8x512xf32>
    %136 = vector.broadcast %134 : vector<1x512xf32> to vector<8x512xf32>
    %137 = arith.mulf %135, %136 : vector<8x512xf32>
    %138 = arith.addf %132, %137 : vector<8x512xf32>
    %139 = vector.extract_strided_slice %138 {offsets = [0, 0], sizes = [1, 512], strides = [1, 1]} : vector<8x512xf32> to vector<1x512xf32>
    %c0_28 = arith.constant 0 : index
    %c0_29 = arith.constant 0 : index
    %140 = vector.load %arg3[%c0_28, %c0_29] : memref<1x512xf32, #tpu.memory_space<vmem>>, vector<1x512xf32>
    tpu.vector_store %arg3[%c0_28, %c0_29], %139 {strides = array<i32>} : memref<1x512xf32, #tpu.memory_space<vmem>>, vector<1x512xf32>,
    return
  }
  func.func @transform_0(%arg0: i32) -> (i32, i32) {
    %c0_i32 = arith.constant 0 : i32
    %c0_i32_0 = arith.constant 0 : i32
    %c0_i32_1 = arith.constant 0 : i32
    return %c0_i32, %c0_i32_0 : i32, i32
  }
  func.func @transform_1(%arg0: i32) -> (i32, i32) {
    %c0_i32 = arith.constant 0 : i32
    %c0_i32_0 = arith.constant 0 : i32
    return %c0_i32, %arg0 : i32, i32
  }
  func.func @transform_2(%arg0: i32) -> (i32, i32) {
    %c0_i32 = arith.constant 0 : i32
    %c0_i32_0 = arith.constant 0 : i32
    return %c0_i32, %arg0 : i32, i32
  }
}

</mosaic_0001>

<bundles_post_ra>
// kernel: tpu_custom_call.1
= control target key start
LH: loop header
LB: loop body
LE: loop exit
PB: predicated region body
PF: predicated region fallthrough
CT: control target
= control target key end

     0   :  { %7 = vsyncpa [#allocation3], 0  ;;  %s1534_s0 = inlined_call_operand.hbm [shape: f32[8,128], index: 0, kind: input, shape index: {}]   ;;  %s1535_s1 = inlined_call_operand.hbm [shape: f32[8,1024], index: 1, kind: input, shape index: {}]   ;;  %s1536_s2 = inlined_call_operand.hbm [shape: f32[1,1024], index: 2, kind: output, shape index: {}]  }
   0x1   :  { %8 = vsyncpa [#allocation6], 0 }
   0x2   :  { %10 = vsyncpa [#allocation6 + $0x1], 0 }
   0x3   :  { %11 = vsyncpa [#allocation4], 0 }
   0x4   :  { %13 = vsyncpa [#allocation4 + $0x1], 0  ;;  %s1197_s9 = smov 0   ;;  %s1199_s10 = smov 0  }
   0x5   :  { %s1201_s11 = smov 0   ;;  %s1203_s12 = smov 0  }
   0x6 LB: > { %s1218_s13 = sadd.s32 4294967295, %s1152_s12   ;;  %s900_s14 = sadd.s32 4294967294, %s1152_s12   ;;  %s1152_s12 = sphi %s1203_s12, %s1560_s12   ;;  %s1148_s11 = sphi %s1201_s11, %s1559_s11   ;;  %s1144_s10 = sphi %s1199_s10, %s1558_s10   ;;  %s1140_s9 = sphi %s1197_s9, %s1557_s9  }
   0x7   : > { %p60_p0 = scmp.ne.s32.totalorder %s1144_s10, %s1140_s9  ;;  %p1537_p1 = scmp.eq.s32.totalorder %s1218_s13, 0 }
   0x8   : > { %p90_p3 = scmp.eq.s32.totalorder %s900_s14, 1  ;;  %p901_p5 = scmp.ge.s32.totalorder %s1152_s12, 1 }
   0x9   : > { %p1227_p4 = por %p1537_p1, %p60_p0  ;;  %p97_p7 = scmp.lt.s32.totalorder %s1152_s12, 3 }
   0xa   : > { %p1232_p6 = por %p90_p3, %p60_p0  ;;  %s1154_s18 = smov [#allocation2]  }
   0xb   : > { %s1540_s15 = scalar_select %p1227_p4, 1, 0 }
   0xc   : > { %s1541_s16 = scalar_select %p1232_p6, 1, 0 }
   0xd   : > { %p1237_p8 = pnand %p901_p5, %p97_p7  ;;  %s110_s19 = sshll.u32 %s1154_s18, 4  ;;  %s111_s19 = int_to_ptr.vmem [resolvable:$true] %s110_s19 }
   0xe   : > { %s1245_s20 = sadd.s32 1, %s1152_s12   ;;  %s47_s24 = sadd.s32 1, %s1148_s11 }
   0xf   : > { %s1542_s17 = scalar_select %p1237_p8, 1, 0 }
  0x10   : > { %p926_p10 = pneg %p1237_p8  ;;  %s44_s22 = ssub.s32 %s1152_s12, %s1245_s20 }
  0x11   : > { %p1255_p12 = scmp.eq.s32.totalorder %s44_s22, 0  ;;  %s1024_s27 = scalar_lea.hbm %s1534_s0, 128 }
  0x12   : > { %p1249_p11 = pnand %p926_p10, %p1537_p1  ;;  %p1025_p0 = scmp.ne.s32.totalorder %s1534_s0, %s1024_s27 }
  0x13   : > { %s1544_s23 = scalar_select %p1255_p12, 1, 0 }
  0x14   : > { %p1026_p3 = pneg %p1249_p11  ;;  %p1031_p10 = scmp.lt.u32.totalorder %s1024_s27, %s1534_s0 }
  0x16   : > { %p1027_p5 = pnand %p1026_p3, %p1025_p0 }
  0x18   : > { %p1028_p7 = pneg %p1027_p5 }
  0x1a   : > { %p1033_p9 = pnand %p1031_p10, %p1028_p7 }
  0x1c   : > { %1036 = shalt.err (!%p1033_p9)
}
  0x1d   : > { %s1037_s4 = scalar_lea.vmem %s111_s19, 128  ;;  %p1045_p6 = scmp.lt.s32.totalorder %s111_s19, %s111_s19 }
  0x1e   : > { %p1038_p1 = scmp.ne.s32.totalorder %s111_s19, %s1037_s4  ;;  %p1046_p4 = scmp.lt.s32.totalorder %s1037_s4, %s1037_s4 }
  0x20   : > { %p1040_p2 = pnand %p1038_p1, %p1026_p3  ;;  %p1047_p8 = por %p1046_p4, %p1045_p6 }
  0x22   : > { %p1041_p13 = pneg %p1040_p2 }
  0x24   : > { %p1048_p12 = pnand %p1047_p8, %p1041_p13 }
  0x26   : > { %1051 = shalt.err (!%p1048_p12)
}
  0x27   : > { %929 = dma.hbm_to_vmem [thread:$0]  (!%p1249_p11), %s1534_s0, 128, %s111_s19, [#allocation3]  }
  0x28   : > { %p1545_p1 = scmp.ne.s32.totalorder %s1544_s23, 0  ;;  %p55_p2 = scmp.eq.s32.totalorder %s1152_s12, 0 }
  0x29   : > { %p1546_p4 = scmp.ne.s32.totalorder %s1148_s11, %s1144_s10  ;;  %p1547_p6 = scmp.eq.s32.totalorder %s1218_s13, 1 }
  0x2a   : > { %s1281_s7 = scalar_select %p1545_p1, %s1148_s11, %s47_s24  }
  0x2b   : > { %p1289_p8 = por %p1547_p6, %p1546_p4  ;;  %p939_p9 = scmp.lt.s32.totalorder %s1152_s12, 2 }
  0x2c   : > { %s121_s14 = sand.u32 1, %s1148_s11   ;;  %p1549_p12 = pmov %p1546_p4 }
  0x2d   : > { %s904_s18 = sshll.u32 %s121_s14, 5  ;;  %s916_s21 = sshll.u32 %s1152_s12, 9 }
  0x2e   : > { %p56_p13 = por %p55_p2, %p1549_p12  ;;  %s1302_s19 = scalar_lea.hbm %s1535_s1, %s916_s21 }
  0x2f   : > { %s125_s23 = scalar_lea.vmem [#allocation5], %s904_s18  ;;  %s122_s27 = scalar_lea.sflag [#allocation6], %s121_s14 }
  0x30   : > { %s133_s24 = sshll.u32 %s125_s23, 4  ;;  %p1304_p11 = pnand %p939_p9, %p56_p13  ;;  %s1308_s24 = int_to_ptr.vmem [resolvable:$true] %s133_s24 }
  0x31   : > { %s1052_s28 = scalar_lea.hbm %s1302_s19, 512  ;;  %s1057_s3 = scalar_lea.hbm %s1535_s1, 1024 }
  0x32   : > { %p1053_p0 = scmp.ne.s32.totalorder %s1302_s19, %s1052_s28  ;;  %p1054_p3 = pneg %p1304_p11 }
  0x33   : > { %p1058_p10 = scmp.lt.u32.totalorder %s1302_s19, %s1535_s1  ;;  %p1059_p1 = scmp.lt.u32.totalorder %s1057_s3, %s1052_s28 }
  0x34   : > { %p1055_p5 = pnand %p1054_p3, %p1053_p0  ;;  %p1061_p4 = scmp.lt.u32.totalorder %s1052_s28, %s1302_s19 }
  0x35   : > { %p1060_p2 = por %p1059_p1, %p1058_p10 }
  0x36   : > { %p1056_p7 = pneg %p1055_p5 }
  0x37   : > { %p1062_p6 = por %p1061_p4, %p1060_p2 }
  0x39   : > { %p1063_p9 = pnand %p1062_p6, %p1056_p7 }
  0x3b   : > { %1066 = shalt.err (!%p1063_p9)
}
  0x3c   : > { %s1067_s6 = scalar_lea.vmem %s1308_s24, 512  ;;  %s1155_s14 = smov [#allocation5]  }
  0x3d   : > { %p1068_p12 = scmp.ne.s32.totalorder %s1308_s24, %s1067_s6  ;;  %s1072_s18 = sshll.u32 %s1155_s14, 4  ;;  %s1073_s18 = int_to_ptr.vmem [resolvable:$false] %s1072_s18 }
  0x3e   : > { %s1074_s21 = scalar_lea.vmem %s1073_s18, 1024  ;;  %p1075_p5 = scmp.lt.s32.totalorder %s1308_s24, %s1073_s18 }
  0x3f   : > { %p1070_p13 = pnand %p1068_p12, %p1054_p3  ;;  %p1076_p10 = scmp.lt.s32.totalorder %s1074_s21, %s1067_s6 }
  0x41   : > { %p1071_p0 = pneg %p1070_p13  ;;  %p1077_p1 = por %p1076_p10, %p1075_p5 }
  0x43   : > { %p1078_p2 = pnand %p1077_p1, %p1071_p0 }
  0x45   : > { %1081 = shalt.err (!%p1078_p2)
}
  0x46   : > { %933 = dma.hbm_to_vmem [thread:$0]  (!%p1304_p11), %s1302_s19, 512, %s1308_s24, %s122_s27  }
  0x47   : > { %p1551_p7 = scmp.ne.s32.totalorder %s1542_s17, 0 }
  0x48   : > { %p1552_p3 = scmp.eq.s32.totalorder (!%p1551_p7), %s1218_s13, 0 }
  0x49   : > { %142 = sbr.rel (%p1551_p7) target bundleno = 313 (0x139), region = 28 }
  0x50   : > { %1127 = dma.done.wait (%p1552_p3), [#allocation3], 128   ;;  %p1553_p4 = pmov %p1552_p3 }
  0x51   : > { %s1342_s22 = sand.u32 1, %s1144_s10   ;;  %p1554_p11 = scmp.ne.s32.totalorder %s1540_s15, 0 }
  0x52   : > { %1129 = vsyncadd (%p1553_p4), [#allocation3], 4294967168  ;;  %s909_s25 = sshll.u32 %s1342_s22, 5  ;;  %s149_s23 = scalar_lea.sflag [#allocation6], %s1342_s22 }
  0x53   : > { %s1346_s26 = scalar_lea.vmem [#allocation5], %s909_s25 }
  0x54   : > { %1131 = dma.done.wait (%p1554_p11), %s149_s23, 512  }
  0x55   : > { %1133 = vsyncadd (%p1554_p11), %s149_s23, 4294966784  ;;  %v1156_v0 = vmov 1   ;;  %v1157_v1 = vmov 0   ;;  %v1352_v2 = vld [vmem:[#allocation2] sm:$0xff]  ;;  %v1158_v3 = vmov 2   ;;  %v1159_v4 = vmov 5  }
  0x56   : > { %1002 = vset.pattern.permute.xlu1 %v1156_v0  ;;  %1000 = vset.pattern.permute.xlu0 %v1157_v1  ;;  %v1160_v5 = vmov 3   ;;  %v1161_v6 = vmov 4   ;;  %v1162_v7 = vmov 8   ;;  %v1163_v8 = vmov 9   ;;  %v175_v29 = vld [vmem:[%s1346_s26] sm:$0xff]  ;;  %v176_v30 = vld [vmem:[%s1346_s26 + $0x8] sm:$0xff] }
  0x57   : > { %214 = vperm.xlu1 %1002, %v1352_v2   ;;  %186 = vperm.xlu0 %1000, %v1352_v2   ;;  %v1164_v9 = vmov 13   ;;  %v1165_v10 = vmov 12   ;;  %v1166_v11 = vmov 10   ;;  %v1167_v12 = vmov 17   ;;  %v177_v31 = vld [vmem:[%s1346_s26 + $0x10] sm:$0xff]  ;;  %v178_v32 = vld [vmem:[%s1346_s26 + $0x18] sm:$0xff] }
  0x58   : > { %v1168_v13 = vmov 11   ;;  %v1169_v14 = vmov 20   ;;  %v1170_v15 = vmov 16   ;;  %v1171_v16 = vmov 25   ;;  %s910_s15 = sshll.u32 %s1342_s22, 2  ;;  %s917_s17 = sshll.u32 %s1218_s13, 6 }
  0x59   : > { %v1172_v17 = vmov 21   ;;  %v1173_v18 = vmov 28   ;;  %v1174_v19 = vmov 18   ;;  %v1175_v20 = vmov 19   ;;  %s172_s19 = scalar_lea.vmem [#allocation7], %s910_s15  ;;  %s1490_s29 = scalar_lea.hbm %s1536_s2, %s917_s17 }
  0x5a   : > { %v1176_v21 = vmov 24   ;;  %v1177_v22 = vmov 29   ;;  %v1178_v23 = vmov 26   ;;  %v1179_v24 = vmov 27   ;;  %s818_s24 = sshll.u32 %s172_s19, 4  ;;  %s804_s30 = scalar_lea.sflag [#allocation4], %s1342_s22  ;;  %s1492_s24 = int_to_ptr.vmem [resolvable:$true] %s818_s24 }
  0x5b   : > { %1003 = vset.pattern.permute.xlu1 %v1158_v3  ;;  %1001 = vset.pattern.permute.xlu0 %v1159_v4  ;;  %v189_v25 = vlaneseq  ;;  %s1082_s3 = scalar_lea.vmem %s1492_s24, 64  ;;  %s1181_s13 = smov [#allocation7]  }
  0x5c   : > { %242 = vperm.xlu1 %1003, %v1352_v2   ;;  %182 = vperm.xlu0 %1001, %v1352_v2   ;;  %p1083_p6 = scmp.ne.s32.totalorder %s1492_s24, %s1082_s3  ;;  %s1086_s4 = sshll.u32 %s1181_s13, 4  ;;  %s1087_s4 = int_to_ptr.vmem [resolvable:$false] %s1086_s4 }
  0x5d   : > { %v1379_v26 = vshrl.u32 %v189_v25, 7  ;;  %vm800_vm0 = vcmp.lt.s32.totalorder %v189_v25, 512  ;;  %s1088_s5 = scalar_lea.vmem %s1087_s4, 128  ;;  %p1089_p13 = scmp.lt.s32.totalorder %s1492_s24, %s1087_s4 }
  0x5e   : > { %p1084_p9 = pnand %p1083_p6, %p1289_p8  ;;  %p1090_p0 = scmp.lt.s32.totalorder %s1088_s5, %s1082_s3 }
  0x5f   : > { %v1382_v27 = vsub.s32 0, %v1379_v26  ;;  %v1385_v28 = vsub.s32 1, %v1379_v26  ;;  %v1392_v33 = vsub.s32 2, %v1379_v26  ;;  %v1400_v41 = vsub.s32 3, %v1379_v26 }
  0x60   : > { %1004 = vset.pattern.permute.xlu1 %v1160_v5  ;;  %1005 = vset.pattern.permute.xlu0 %v1161_v6  ;;  %v1406_v45 = vsub.s32 4, %v1379_v26  ;;  %p1085_p12 = pneg %p1084_p9  ;;  %p1091_p5 = por %p1090_p0, %p1089_p13 }
  0x61   : > { %270 = vperm.xlu1 %1004, %v1352_v2   ;;  %298 = vperm.xlu0 %1005, %v1352_v2   ;;  %v192_v34 = vrot.slane %v175_v29, %v1382_v27  ;;  %v196_v35 = vrot.slane %v176_v30, %v1382_v27  ;;  %v200_v36 = vrot.slane %v177_v31, %v1382_v27 }
  0x62   : > { %v204_v37 = vrot.slane %v178_v32, %v1382_v27  ;;  %v220_v39 = vrot.slane %v175_v29, %v1385_v28  ;;  %v224_v42 = vrot.slane %v176_v30, %v1385_v28  ;;  %v228_v43 = vrot.slane %v177_v31, %v1385_v28  ;;  %p1092_p10 = pnand %p1091_p5, %p1085_p12 }
  0x63   : > { %v232_v44 = vrot.slane %v178_v32, %v1385_v28  ;;  %v248_v46 = vrot.slane %v175_v29, %v1392_v33  ;;  %v252_v47 = vrot.slane %v176_v30, %v1392_v33  ;;  %v256_v48 = vrot.slane %v177_v31, %v1392_v33 }
  0x64   : > { %v260_v49 = vrot.slane %v178_v32, %v1392_v33  ;;  %v276_v54 = vrot.slane %v175_v29, %v1400_v41  ;;  %v280_v55 = vrot.slane %v176_v30, %v1400_v41  ;;  %v284_v56 = vrot.slane %v177_v31, %v1400_v41 }
  0x65   : > { %1006 = vset.pattern.permute.xlu1 %v1162_v7  ;;  %1008 = vset.pattern.permute.xlu0 %v1163_v8  ;;  %v288_v57 = vrot.slane %v178_v32, %v1400_v41  ;;  %v304_v60 = vrot.slane %v175_v29, %v1406_v45  ;;  %v308_v61 = vrot.slane %v176_v30, %v1406_v45 }
  0x66   : > { %334 = vperm.xlu1 %1006, %v1352_v2   ;;  %362 = vperm.xlu0 %1008, %v1352_v2   ;;  %v312_v62 = vrot.slane %v177_v31, %v1406_v45  ;;  %v316_v63 = vrot.slane %v178_v32, %v1406_v45 }
  0x6a   : > { %1007 = vset.pattern.permute.xlu1 %v1164_v9  ;;  %1011 = vset.pattern.permute.xlu0 %v1165_v10 }
  0x6b   : > { %330 = vperm.xlu1 %1007, %v1352_v2   ;;  %446 = vperm.xlu0 %1011, %v1352_v2  }
  0x6f   : > { %1009 = vset.pattern.permute.xlu1 %v1166_v11  ;;  %1014 = vset.pattern.permute.xlu0 %v1167_v12 }
  0x70   : > { %390 = vperm.xlu1 %1009, %v1352_v2   ;;  %510 = vperm.xlu0 %1014, %v1352_v2  }
  0x74   : > { %1010 = vset.pattern.permute.xlu1 %v1168_v13  ;;  %1017 = vset.pattern.permute.xlu0 %v1169_v14 }
  0x75   : > { %418 = vperm.xlu1 %1010, %v1352_v2   ;;  %594 = vperm.xlu0 %1017, %v1352_v2  }
  0x79   : > { %1012 = vset.pattern.permute.xlu1 %v1170_v15  ;;  %1020 = vset.pattern.permute.xlu0 %v1171_v16 }
  0x7a   : > { %482 = vperm.xlu1 %1012, %v1352_v2   ;;  %658 = vperm.xlu0 %1020, %v1352_v2  }
  0x7e   : > { %1013 = vset.pattern.permute.xlu1 %v1172_v17  ;;  %1023 = vset.pattern.permute.xlu0 %v1173_v18 }
  0x7f   : > { %478 = vperm.xlu1 %1013, %v1352_v2   ;;  %742 = vperm.xlu0 %1023, %v1352_v2  }
  0x83   : > { %1015 = vset.pattern.permute.xlu1 %v1174_v19 }
  0x84   : > { %538 = vperm.xlu1 %1015, %v1352_v2  }
  0x88   : > { %1016 = vset.pattern.permute.xlu1 %v1175_v20 }
  0x89   : > { %566 = vperm.xlu1 %1016, %v1352_v2  }
  0x8d   : > { %1018 = vset.pattern.permute.xlu1 %v1176_v21 }
  0x8e   : > { %630 = vperm.xlu1 %1018, %v1352_v2  }
  0x92   : > { %1019 = vset.pattern.permute.xlu1 %v1177_v22 }
  0x93   : > { %626 = vperm.xlu1 %1019, %v1352_v2  }
  0x97   : > { %1021 = vset.pattern.permute.xlu1 %v1178_v23 }
  0x98   : > { %686 = vperm.xlu1 %1021, %v1352_v2  }
  0x9c   : > { %1022 = vset.pattern.permute.xlu1 %v1179_v24 }
  0x9d   : > { %714 = vperm.xlu1 %1022, %v1352_v2  }
  0xd6   : > { %v215_v38 = vpop.permute.xlu1 %214  ;;  %v187_v40 = vpop.permute.xlu0 %186 }
  0xd7   : > { %v205_v50 = vmul.f32 %v192_v34, %v187_v40  ;;  %v206_v51 = vmul.f32 %v196_v35, %v187_v40  ;;  %v207_v52 = vmul.f32 %v200_v36, %v187_v40  ;;  %v208_v53 = vmul.f32 %v204_v37, %v187_v40 }
  0xd8   : > { %v233_v0 = vmul.f32 %v220_v39, %v215_v38  ;;  %v234_v1 = vmul.f32 %v224_v42, %v215_v38  ;;  %v235_v2 = vmul.f32 %v228_v43, %v215_v38  ;;  %v236_v3 = vmul.f32 %v232_v44, %v215_v38 }
  0xdb   : > { %v243_v58 = vpop.permute.xlu1 %242  ;;  %v183_v59 = vpop.permute.xlu0 %182 }
  0xdc   : > { %v209_v4 = vadd.f32 %v205_v50, %v183_v59  ;;  %v210_v5 = vadd.f32 %v206_v51, %v183_v59  ;;  %v211_v6 = vadd.f32 %v207_v52, %v183_v59  ;;  %v212_v7 = vadd.f32 %v208_v53, %v183_v59 }
  0xdd   : > { %v261_v8 = vmul.f32 %v248_v46, %v243_v58  ;;  %v262_v9 = vmul.f32 %v252_v47, %v243_v58  ;;  %v263_v10 = vmul.f32 %v256_v48, %v243_v58  ;;  %v264_v11 = vmul.f32 %v260_v49, %v243_v58 }
  0xde   : > { %v237_v12 = vadd.f32 %v233_v0, %v209_v4  ;;  %v238_v13 = vadd.f32 %v234_v1, %v210_v5  ;;  %v239_v14 = vadd.f32 %v235_v2, %v211_v6  ;;  %v240_v15 = vadd.f32 %v236_v3, %v212_v7 }
  0xe0   : > { %v271_v16 = vpop.permute.xlu1 %270  ;;  %v299_v17 = vpop.permute.xlu0 %298  ;;  %v265_v18 = vadd.f32 %v261_v8, %v237_v12  ;;  %v266_v19 = vadd.f32 %v262_v9, %v238_v13  ;;  %v267_v20 = vadd.f32 %v263_v10, %v239_v14  ;;  %v268_v21 = vadd.f32 %v264_v11, %v240_v15 }
  0xe1   : > { %v289_v22 = vmul.f32 %v276_v54, %v271_v16  ;;  %v290_v23 = vmul.f32 %v280_v55, %v271_v16  ;;  %v291_v24 = vmul.f32 %v284_v56, %v271_v16  ;;  %v292_v29 = vmul.f32 %v288_v57, %v271_v16 }
  0xe2   : > { %v317_v30 = vmul.f32 %v304_v60, %v299_v17  ;;  %v318_v31 = vmul.f32 %v308_v61, %v299_v17  ;;  %v319_v32 = vmul.f32 %v312_v62, %v299_v17  ;;  %v320_v34 = vmul.f32 %v316_v63, %v299_v17 }
  0xe3   : > { %v293_v35 = vadd.f32 %v289_v22, %v265_v18  ;;  %v294_v36 = vadd.f32 %v290_v23, %v266_v19  ;;  %v295_v37 = vadd.f32 %v291_v24, %v267_v20  ;;  %v296_v38 = vadd.f32 %v292_v29, %v268_v21 }
  0xe5   : > { %v335_v39 = vpop.permute.xlu1 %334  ;;  %v321_v40 = vadd.f32 %v317_v30, %v293_v35  ;;  %v322_v42 = vadd.f32 %v318_v31, %v294_v36  ;;  %v323_v43 = vadd.f32 %v319_v32, %v295_v37  ;;  %v324_v44 = vadd.f32 %v320_v34, %v296_v38  ;;  %v363_v63 = vpop.permute.xlu0 %362 }
  0xe7   : > { %v325_v46 = vmax.f32 %v321_v40, 0.0  ;;  %v326_v47 = vmax.f32 %v322_v42, 0.0  ;;  %v327_v48 = vmax.f32 %v323_v43, 0.0  ;;  %v328_v49 = vmax.f32 %v324_v44, 0.0 }
  0xe9   : > { %v340_v50 = vrot.slane %v325_v46, %v1382_v27  ;;  %v344_v51 = vrot.slane %v326_v47, %v1382_v27  ;;  %v348_v52 = vrot.slane %v327_v48, %v1382_v27  ;;  %v352_v53 = vrot.slane %v328_v49, %v1382_v27 }
  0xea   : > { %v331_v54 = vpop.permute.xlu1 %330  ;;  %v368_v55 = vrot.slane %v325_v46, %v1385_v28  ;;  %v372_v56 = vrot.slane %v326_v47, %v1385_v28  ;;  %v376_v57 = vrot.slane %v327_v48, %v1385_v28  ;;  %v380_v58 = vrot.slane %v328_v49, %v1385_v28  ;;  %v447_v29 = vpop.permute.xlu0 %446 }
  0xeb   : > { %v353_v59 = vmul.f32 %v340_v50, %v335_v39  ;;  %v354_v60 = vmul.f32 %v344_v51, %v335_v39  ;;  %v355_v61 = vmul.f32 %v348_v52, %v335_v39  ;;  %v356_v62 = vmul.f32 %v352_v53, %v335_v39 }
  0xec   : > { %v381_v4 = vmul.f32 %v368_v55, %v363_v63  ;;  %v382_v5 = vmul.f32 %v372_v56, %v363_v63  ;;  %v383_v6 = vmul.f32 %v376_v57, %v363_v63  ;;  %v384_v7 = vmul.f32 %v380_v58, %v363_v63 }
  0xed   : > { %v357_v0 = vadd.f32 %v353_v59, %v331_v54  ;;  %v358_v1 = vadd.f32 %v354_v60, %v331_v54  ;;  %v359_v2 = vadd.f32 %v355_v61, %v331_v54  ;;  %v360_v3 = vadd.f32 %v356_v62, %v331_v54 }
  0xee   : > { %v452_v9 = vrot.slane %v325_v46, %v1406_v45  ;;  %v456_v10 = vrot.slane %v326_v47, %v1406_v45  ;;  %v460_v11 = vrot.slane %v327_v48, %v1406_v45  ;;  %v464_v12 = vrot.slane %v328_v49, %v1406_v45 }
  0xef   : > { %v391_v8 = vpop.permute.xlu1 %390  ;;  %v385_v13 = vadd.f32 %v381_v4, %v357_v0  ;;  %v386_v14 = vadd.f32 %v382_v5, %v358_v1  ;;  %v387_v15 = vadd.f32 %v383_v6, %v359_v2  ;;  %v388_v16 = vadd.f32 %v384_v7, %v360_v3 }
  0xf0   : > { %v396_v17 = vrot.slane %v325_v46, %v1392_v33  ;;  %v400_v18 = vrot.slane %v326_v47, %v1392_v33  ;;  %v404_v19 = vrot.slane %v327_v48, %v1392_v33  ;;  %v408_v20 = vrot.slane %v328_v49, %v1392_v33 }
  0xf1   : > { %v424_v21 = vrot.slane %v325_v46, %v1400_v41  ;;  %v428_v22 = vrot.slane %v326_v47, %v1400_v41  ;;  %v432_v23 = vrot.slane %v327_v48, %v1400_v41  ;;  %v436_v24 = vrot.slane %v328_v49, %v1400_v41 }
  0xf2   : > { %v409_v30 = vmul.f32 %v396_v17, %v391_v8  ;;  %v410_v31 = vmul.f32 %v400_v18, %v391_v8  ;;  %v411_v32 = vmul.f32 %v404_v19, %v391_v8  ;;  %v412_v34 = vmul.f32 %v408_v20, %v391_v8 }
  0xf3   : > { %v465_v46 = vmul.f32 %v452_v9, %v447_v29  ;;  %v466_v47 = vmul.f32 %v456_v10, %v447_v29  ;;  %v467_v50 = vmul.f32 %v460_v11, %v447_v29  ;;  %v468_v48 = vmul.f32 %v464_v12, %v447_v29  ;;  %v511_v12 = vpop.permute.xlu0 %510 }
  0xf4   : > { %v419_v35 = vpop.permute.xlu1 %418  ;;  %v413_v40 = vadd.f32 %v409_v30, %v385_v13  ;;  %v414_v42 = vadd.f32 %v410_v31, %v386_v14  ;;  %v415_v43 = vadd.f32 %v411_v32, %v387_v15  ;;  %v416_v44 = vadd.f32 %v412_v34, %v388_v16 }
  0xf5   : > { %v437_v36 = vmul.f32 %v424_v21, %v419_v35  ;;  %v438_v37 = vmul.f32 %v428_v22, %v419_v35  ;;  %v439_v38 = vmul.f32 %v432_v23, %v419_v35  ;;  %v440_v39 = vmul.f32 %v436_v24, %v419_v35 }
  0xf7   : > { %v441_v51 = vadd.f32 %v437_v36, %v413_v40  ;;  %v442_v49 = vadd.f32 %v438_v37, %v414_v42  ;;  %v443_v52 = vadd.f32 %v439_v38, %v415_v43  ;;  %v444_v53 = vadd.f32 %v440_v39, %v416_v44  ;;  %v595_v44 = vpop.permute.xlu0 %594 }
  0xf9   : > { %v483_v54 = vpop.permute.xlu1 %482  ;;  %v469_v55 = vadd.f32 %v465_v46, %v441_v51  ;;  %v470_v56 = vadd.f32 %v466_v47, %v442_v49  ;;  %v471_v57 = vadd.f32 %v467_v50, %v443_v52  ;;  %v472_v58 = vadd.f32 %v468_v48, %v444_v53 }
  0xfb   : > { %v473_v59 = vmax.f32 %v469_v55, 0.0  ;;  %v474_v60 = vmax.f32 %v470_v56, 0.0  ;;  %v475_v61 = vmax.f32 %v471_v57, 0.0  ;;  %v476_v62 = vmax.f32 %v472_v58, 0.0 }
  0xfd   : > { %v488_v63 = vrot.slane %v473_v59, %v1382_v27  ;;  %v492_v0 = vrot.slane %v474_v60, %v1382_v27  ;;  %v496_v1 = vrot.slane %v475_v61, %v1382_v27  ;;  %v500_v2 = vrot.slane %v476_v62, %v1382_v27 }
  0xfe   : > { %v479_v3 = vpop.permute.xlu1 %478  ;;  %v516_v4 = vrot.slane %v473_v59, %v1385_v28  ;;  %v520_v5 = vrot.slane %v474_v60, %v1385_v28  ;;  %v524_v6 = vrot.slane %v475_v61, %v1385_v28  ;;  %v528_v7 = vrot.slane %v476_v62, %v1385_v28 }
  0xff   : > { %v501_v8 = vmul.f32 %v488_v63, %v483_v54  ;;  %v502_v9 = vmul.f32 %v492_v0, %v483_v54  ;;  %v503_v10 = vmul.f32 %v496_v1, %v483_v54  ;;  %v504_v11 = vmul.f32 %v500_v2, %v483_v54 }
 0x100   : > { %v529_v17 = vmul.f32 %v516_v4, %v511_v12  ;;  %v530_v18 = vmul.f32 %v520_v5, %v511_v12  ;;  %v531_v19 = vmul.f32 %v524_v6, %v511_v12  ;;  %v532_v20 = vmul.f32 %v528_v7, %v511_v12 }
 0x101   : > { %v505_v13 = vadd.f32 %v501_v8, %v479_v3  ;;  %v506_v14 = vadd.f32 %v502_v9, %v479_v3  ;;  %v507_v15 = vadd.f32 %v503_v10, %v479_v3  ;;  %v508_v16 = vadd.f32 %v504_v11, %v479_v3 }
 0x102   : > { %v600_v22 = vrot.slane %v473_v59, %v1406_v45  ;;  %v604_v23 = vrot.slane %v474_v60, %v1406_v45  ;;  %v608_v24 = vrot.slane %v475_v61, %v1406_v45  ;;  %v612_v29 = vrot.slane %v476_v62, %v1406_v45 }
 0x103   : > { %v539_v21 = vpop.permute.xlu1 %538  ;;  %v533_v30 = vadd.f32 %v529_v17, %v505_v13  ;;  %v534_v31 = vadd.f32 %v530_v18, %v506_v14  ;;  %v535_v32 = vadd.f32 %v531_v19, %v507_v15  ;;  %v536_v34 = vadd.f32 %v532_v20, %v508_v16 }
 0x104   : > { %v544_v35 = vrot.slane %v473_v59, %v1392_v33  ;;  %v548_v36 = vrot.slane %v474_v60, %v1392_v33  ;;  %v552_v37 = vrot.slane %v475_v61, %v1392_v33  ;;  %v556_v38 = vrot.slane %v476_v62, %v1392_v33 }
 0x105   : > { %v572_v39 = vrot.slane %v473_v59, %v1400_v41  ;;  %v576_v40 = vrot.slane %v474_v60, %v1400_v41  ;;  %v580_v42 = vrot.slane %v475_v61, %v1400_v41  ;;  %v584_v43 = vrot.slane %v476_v62, %v1400_v41 }
 0x106   : > { %v557_v46 = vmul.f32 %v544_v35, %v539_v21  ;;  %v558_v47 = vmul.f32 %v548_v36, %v539_v21  ;;  %v559_v50 = vmul.f32 %v552_v37, %v539_v21  ;;  %v560_v48 = vmul.f32 %v556_v38, %v539_v21 }
 0x107   : > { %v613_v59 = vmul.f32 %v600_v22, %v595_v44  ;;  %v614_v60 = vmul.f32 %v604_v23, %v595_v44  ;;  %v615_v63 = vmul.f32 %v608_v24, %v595_v44  ;;  %v616_v61 = vmul.f32 %v612_v29, %v595_v44 }
 0x108   : > { %v567_v51 = vpop.permute.xlu1 %566  ;;  %v561_v55 = vadd.f32 %v557_v46, %v533_v30  ;;  %v562_v56 = vadd.f32 %v558_v47, %v534_v31  ;;  %v563_v57 = vadd.f32 %v559_v50, %v535_v32  ;;  %v564_v58 = vadd.f32 %v560_v48, %v536_v34  ;;  %v659_v32 = vpop.permute.xlu0 %658 }
 0x109   : > { %v585_v49 = vmul.f32 %v572_v39, %v567_v51  ;;  %v586_v52 = vmul.f32 %v576_v40, %v567_v51  ;;  %v587_v53 = vmul.f32 %v580_v42, %v567_v51  ;;  %v588_v54 = vmul.f32 %v584_v43, %v567_v51 }
 0x10a   : > { %v1180_v12 = vmov 1966171168  }
 0x10b   : > { %v589_v0 = vadd.f32 %v585_v49, %v561_v55  ;;  %v590_v62 = vadd.f32 %v586_v52, %v562_v56  ;;  %v591_v1 = vadd.f32 %v587_v53, %v563_v57  ;;  %v592_v2 = vadd.f32 %v588_v54, %v564_v58 }
 0x10c   : > { %v1460_v13 = vunpack.c.l.s4 %v1180_v12  ;;  %v743_v58 = vpop.permute.xlu0 %742 }
 0x10d   : > { %v631_v3 = vpop.permute.xlu1 %630  ;;  %v617_v4 = vadd.f32 %v613_v59, %v589_v0  ;;  %v618_v5 = vadd.f32 %v614_v60, %v590_v62  ;;  %v619_v6 = vadd.f32 %v615_v63, %v591_v1  ;;  %v620_v7 = vadd.f32 %v616_v61, %v592_v2 }
 0x10e   : > { %v777_v31 = vunpack.c.0.s8 %v1460_v13 }
 0x10f   : > { %v621_v8 = vmax.f32 %v617_v4, 0.0  ;;  %v622_v9 = vmax.f32 %v618_v5, 0.0  ;;  %v623_v10 = vmax.f32 %v619_v6, 0.0  ;;  %v624_v11 = vmax.f32 %v620_v7, 0.0 }
 0x111   : > { %v636_v14 = vrot.slane %v621_v8, %v1382_v27  ;;  %v640_v15 = vrot.slane %v622_v9, %v1382_v27  ;;  %v644_v16 = vrot.slane %v623_v10, %v1382_v27  ;;  %v648_v17 = vrot.slane %v624_v11, %v1382_v27 }
 0x112   : > { %v627_v18 = vpop.permute.xlu1 %626  ;;  %v664_v19 = vrot.slane %v621_v8, %v1385_v28  ;;  %v668_v20 = vrot.slane %v622_v9, %v1385_v28  ;;  %v672_v21 = vrot.slane %v623_v10, %v1385_v28  ;;  %v676_v22 = vrot.slane %v624_v11, %v1385_v28 }
 0x113   : > { %v649_v23 = vmul.f32 %v636_v14, %v631_v3  ;;  %v650_v24 = vmul.f32 %v640_v15, %v631_v3  ;;  %v651_v29 = vmul.f32 %v644_v16, %v631_v3  ;;  %v652_v30 = vmul.f32 %v648_v17, %v631_v3 }
 0x114   : > { %v677_v37 = vmul.f32 %v664_v19, %v659_v32  ;;  %v678_v38 = vmul.f32 %v668_v20, %v659_v32  ;;  %v679_v39 = vmul.f32 %v672_v21, %v659_v32  ;;  %v680_v40 = vmul.f32 %v676_v22, %v659_v32 }
 0x115   : > { %v653_v34 = vadd.f32 %v649_v23, %v627_v18  ;;  %v654_v35 = vadd.f32 %v650_v24, %v627_v18  ;;  %v655_v36 = vadd.f32 %v651_v29, %v627_v18  ;;  %v656_v27 = vadd.f32 %v652_v30, %v627_v18 }
 0x116   : > { %v748_v43 = vrot.slane %v621_v8, %v1406_v45  ;;  %v752_v28 = vrot.slane %v622_v9, %v1406_v45  ;;  %v756_v44 = vrot.slane %v623_v10, %v1406_v45  ;;  %v760_v46 = vrot.slane %v624_v11, %v1406_v45 }
 0x117   : > { %v687_v42 = vpop.permute.xlu1 %686  ;;  %v681_v47 = vadd.f32 %v677_v37, %v653_v34  ;;  %v682_v50 = vadd.f32 %v678_v38, %v654_v35  ;;  %v683_v48 = vadd.f32 %v679_v39, %v655_v36  ;;  %v684_v51 = vadd.f32 %v680_v40, %v656_v27 }
 0x118   : > { %v692_v49 = vrot.slane %v621_v8, %v1392_v33  ;;  %v696_v52 = vrot.slane %v622_v9, %v1392_v33  ;;  %v700_v53 = vrot.slane %v623_v10, %v1392_v33  ;;  %v704_v54 = vrot.slane %v624_v11, %v1392_v33 }
 0x119   : > { %v720_v55 = vrot.slane %v621_v8, %v1400_v41  ;;  %v724_v56 = vrot.slane %v622_v9, %v1400_v41  ;;  %v728_v57 = vrot.slane %v623_v10, %v1400_v41  ;;  %v732_v45 = vrot.slane %v624_v11, %v1400_v41 }
 0x11a   : > { %v705_v59 = vmul.f32 %v692_v49, %v687_v42  ;;  %v706_v60 = vmul.f32 %v696_v52, %v687_v42  ;;  %v707_v63 = vmul.f32 %v700_v53, %v687_v42  ;;  %v708_v61 = vmul.f32 %v704_v54, %v687_v42 }
 0x11b   : > { %v761_v7 = vmul.f32 %v748_v43, %v743_v58  ;;  %v762_v8 = vmul.f32 %v752_v28, %v743_v58  ;;  %v763_v9 = vmul.f32 %v756_v44, %v743_v58  ;;  %v764_v41 = vmul.f32 %v760_v46, %v743_v58 }
 0x11c   : > { %v715_v0 = vpop.permute.xlu1 %714  ;;  %v709_v33 = vadd.f32 %v705_v59, %v681_v47  ;;  %v710_v4 = vadd.f32 %v706_v60, %v682_v50  ;;  %v711_v5 = vadd.f32 %v707_v63, %v683_v48  ;;  %v712_v6 = vadd.f32 %v708_v61, %v684_v51 }
 0x11d   : > { %v733_v62 = vmul.f32 %v720_v55, %v715_v0  ;;  %v734_v1 = vmul.f32 %v724_v56, %v715_v0  ;;  %v735_v2 = vmul.f32 %v728_v57, %v715_v0  ;;  %v736_v3 = vmul.f32 %v732_v45, %v715_v0 }
 0x11e   : > { %v780_v14 = vsub.s32 %v777_v31, %v1379_v26 }
 0x11f   : > { %v737_v10 = vadd.f32 %v733_v62, %v709_v33  ;;  %v738_v11 = vadd.f32 %v734_v1, %v710_v4  ;;  %v739_v12 = vadd.f32 %v735_v2, %v711_v5  ;;  %v740_v13 = vadd.f32 %v736_v3, %v712_v6 }
 0x121   : > { %v765_v15 = vadd.f32 %v761_v7, %v737_v10  ;;  %v766_v16 = vadd.f32 %v762_v8, %v738_v11  ;;  %v767_v17 = vadd.f32 %v763_v9, %v739_v12  ;;  %v768_v18 = vadd.f32 %v764_v41, %v740_v13 }
 0x123   : > { %v773_v19 = vcombine.low %v765_v15, %v766_v16  ;;  %v774_v20 = vcombine.low %v767_v17, %v768_v18 }
 0x125   : > { %v781_v21 = vrot.slane %v773_v19, %v780_v14  ;;  %v788_v22 = vrot.slane %v774_v20, %v780_v14 }
 0x127   : > { %v789_v23 = vcombine.low %v781_v21, %v788_v22 }
 0x129   : > { %v796_v24 = vrot.slane %v789_v23, %v780_v14 }
 0x12b   : > { %802 = vst.msk [vmem:[%s172_s19] sm:$0xf] %vm800_vm0, %v796_v24 }
 0x12c   : > { %1095 = shalt.err (!%p1092_p10)
}
 0x12d   : > { %s1096_s6 = scalar_lea.hbm %s1490_s29, 64  ;;  %s1100_s21 = scalar_lea.hbm %s1536_s2, 128 }
 0x12e   : > { %p1097_p1 = scmp.ne.s32.totalorder %s1490_s29, %s1096_s6  ;;  %p1101_p3 = scmp.lt.u32.totalorder %s1490_s29, %s1536_s2 }
 0x12f   : > { %p1102_p4 = scmp.lt.u32.totalorder %s1100_s21, %s1096_s6  ;;  %p1104_p6 = scmp.lt.u32.totalorder %s1096_s6, %s1490_s29 }
 0x130   : > { %p1098_p2 = pnand %p1097_p1, %p1289_p8 }
 0x131   : > { %p1103_p11 = por %p1102_p4, %p1101_p3 }
 0x132   : > { %p1099_p7 = pneg %p1098_p2 }
 0x133   : > { %p1105_p9 = por %p1104_p6, %p1103_p11 }
 0x135   : > { %p1106_p12 = pnand %p1105_p9, %p1099_p7 }
 0x137   : > { %1109 = shalt.err (!%p1106_p12)
}
 0x138   : > { %924 = dma.vmem_to_hbm [thread:$0]  (%p1289_p8), %s1492_s24, 64, %s1490_s29, %s804_s30  }
 0x139 PF: > { %s830_s23 = sand.u32 1, %s1140_s9   ;;  %p1555_p13 = scmp.ne.s32.totalorder %s1541_s16, 0 }
 0x13a   : > { %p1556_p0 = scmp.ge.s32.totalorder %s1152_s12, 2  ;;  %s831_s26 = scalar_lea.sflag [#allocation4], %s830_s23 }
 0x13c   : > { %p935_p5 = pnand %p1556_p0, %p1555_p13 }
 0x13e   : > { %1135 = dma.done.wait (!%p935_p5), %s831_s26, 64  }
 0x13f   : > { %1137 = vsyncadd (!%p935_p5), %s831_s26, 4294967232  ;;  %p16_p10 = scmp.ge.s32.totalorder %s1245_s20, 4   ;;  %s1557_s9 = smov %s1144_s10 }
 0x140   : > { %s1558_s10 = smov %s1148_s11  ;;  %s1559_s11 = smov %s1281_s7 }
 0x141   : > { %s1560_s12 = smov %s1245_s20  ;;  %18 = sbr.rel (!%p16_p10) target bundleno = 6 (0x6), region = 78 }
 0x148   :  { %836 = vsyncpa [#allocation3], 1 }
 0x149   :  { %838 = vsyncpa [#allocation3 + $0x1], 1 }
 0x14a   :  { %839 = vsyncpa [#allocation6], 1 }
 0x14b   :  { %841 = vsyncpa [#allocation6 + $0x1], 1 }
 0x14c   :  { %842 = vsyncpa [#allocation4], 1 }
 0x14d   :  { %844 = vsyncpa [#allocation4 + $0x1], 1 }

</bundles_post_ra>
